<compile_context>
chip_gen: v7x
topology: tpu7x:2x2x1
jax: 0.10.0
libtpu: 0.0.40
codegen_flags: <defaults>
</compile_context>

<pallas_src>
import functools

import jax
import jax.numpy as jnp
from jax.experimental import pallas as pl
from jax.experimental.pallas import tpu as pltpu

LANES = 128      # TPU lane width; every packed weight block is (128, 128)
SUBLANES = 8     # f32 sublane tile


# ----------------------------- Pallas kernel --------------------------------
def dueling_dqn_kernel(x_ref, w_ref, b_ref, out_ref, *, H, A):
    """x_ref:(TB,128) f32, w_ref:(5,128,128) bf16, b_ref:(8,128) f32,
    out_ref:(2,TB,128) f32.

    Weight slab blocks:
      0: features.0 (S->H)            1: features.2 (H->H)
      2: LSTM W_ih, gate lanes re-packed to [i | o | g | o] (f is dead, c0=0)
      3: fused [advantage_hidden | value_hidden]  (rows [H:] are zero)
      4: fused q head: rows[:H] = mean-centered adv W, rows[H:2H] = tiled value W
    Bias rows 0..4 mirror the blocks (row 2 already holds b_ih + b_hh,
    row 4 already holds (ba - mean(ba)) + bv).
    """
    x = x_ref[...]
    b = b_ref[...]                           # (8, 128) f32, rows 0..4 used

    def mm(act, i):
        # bf16 MXU operands, f32 accumulation -> single vmatmul pass per block.
        return jnp.dot(act.astype(jnp.bfloat16), w_ref[i],
                       preferred_element_type=jnp.float32)

    # Feature MLP (zero-padded rows/cols keep padding lanes at 0).
    f1 = jnp.maximum(mm(x, 0) + b[0:1], 0.0)
    f2 = jnp.maximum(mm(f1, 1) + b[1:2], 0.0)

    # Single-step LSTM with h0 = c0 = 0 (hidden=None path): the forget gate is
    # dead, so c_n = sigmoid(i)*tanh(g) and h_n = sigmoid(o)*tanh(c_n).
    # Gate lanes are packed [i | o | g | o]; the duplicate o in the dead f slot
    # makes both rolls below direction-agnostic (shift H lands an o copy on
    # lanes [:H] either way; shift 2H == 64 is symmetric over 128 lanes).
    gates = mm(f2, 2) + b[2:3]
    sig = jax.nn.sigmoid(gates)              # one full-vreg EUP call (i, o here)
    th = jnp.tanh(gates)                     # one full-vreg EUP call (g here)
    c_full = sig * pltpu.roll(th, 2 * H, 1)  # lanes [:H] = c_n, rest finite junk
    tanh_c = jnp.tanh(c_full)                # lanes [:H] = tanh(c_n)
    o_sig = pltpu.roll(sig, H, 1)            # lanes [:H] = sigmoid(o)
    h_full = o_sig * tanh_c                  # lanes [:H] = h_n, rest finite junk

    # Fused dueling heads on dense vregs: rows [H:] of block 3 are zero, so the
    # junk lanes of h_full are annihilated; block 4's bias/weights already fold
    # in the dueling mean subtraction -> no in-kernel reduction.
    hh = jnp.maximum(mm(h_full, 3) + b[3:4], 0.0)   # [adv_hidden | value_hidden]
    q_full = mm(hh, 4) + b[4:5]                     # q in lanes [:A]

    # Two lane-dense output planes (full unmasked vreg stores):
    #   plane 0: q_values in lanes [:A]
    #   plane 1: c_n in lanes [:H], h_n in lanes [2H:3H]  (other lanes junk)
    lane = jax.lax.broadcasted_iota(jnp.int32, h_full.shape, 1)
    state_plane = jnp.where(lane < H, c_full, pltpu.roll(h_full, 2 * H, 1))

    out_ref[0] = q_full
    out_ref[1] = state_plane


# --------------------------- parameter packing --------------------------------
def pack_params(p, *, S, H, A):
    """Pack all layers into a bf16 (5,128,128) weight slab + f32 (8,128) bias slab.

    Call ONCE per parameter/noise refresh and reuse the slabs across forward
    steps (re-packing per call would dominate wall time at small batch)."""
    w = jnp.zeros((5, LANES, LANES), jnp.float32)
    b = jnp.zeros((SUBLANES, LANES), jnp.float32)

    # blocks 0/1: feature MLP
    w = w.at[0, :S, :H].set(p["w1"])
    b = b.at[0, :H].set(p["b1"].reshape(-1))
    w = w.at[1, :H, :H].set(p["w2"])
    b = b.at[1, :H].set(p["b2"].reshape(-1))

    # block 2: LSTM input->hidden weights.  PyTorch gate order is [i|f|g|o];
    # re-pack to [i | o | g | o] (forget gate is dead since c0 = 0, and the
    # duplicate o copy makes the in-kernel rolls direction-agnostic).
    wih = p["wih"]                           # (H, 4H)
    blstm = p["blstm"].reshape(-1)           # (4H,) = b_ih + b_hh
    w = (w.at[2, :H, 0:H].set(wih[:, 0:H])
           .at[2, :H, H:2 * H].set(wih[:, 3 * H:4 * H])
           .at[2, :H, 2 * H:3 * H].set(wih[:, 2 * H:3 * H])
           .at[2, :H, 3 * H:4 * H].set(wih[:, 3 * H:4 * H]))
    b = (b.at[2, 0:H].set(blstm[0:H])
           .at[2, H:2 * H].set(blstm[3 * H:4 * H])
           .at[2, 2 * H:3 * H].set(blstm[2 * H:3 * H])
           .at[2, 3 * H:4 * H].set(blstm[3 * H:4 * H]))

    # block 3: fused [advantage_hidden | value_hidden]
    w = w.at[3, :H, :H].set(p["wah"]).at[3, :H, H:2 * H].set(p["wvh"])
    b = b.at[3, :H].set(p["bah"].reshape(-1)).at[3, H:2 * H].set(p["bvh"].reshape(-1))

    # block 4: fused q head with the dueling mean folded in at pack time:
    #   q = (adv - mean(adv)) + value
    #     = adv_h @ (wa - mean_cols(wa)) + val_h @ wv + (ba - mean(ba)) + bv
    wa_c = p["wa"] - jnp.mean(p["wa"], axis=1, keepdims=True)
    ba_c = p["ba"].reshape(-1) - jnp.mean(p["ba"])
    w = w.at[4, :H, :A].set(wa_c)
    w = w.at[4, H:2 * H, :A].set(jnp.tile(p["wv"], (1, A)))
    b = b.at[4, :A].set(ba_c + p["bv"].reshape(-1))

    return w.astype(jnp.bfloat16), b


# ------------------------------- wrapper -------------------------------------
def dueling_dqn_forward(state, wslab, bslab, *, H, A, tile_b=256):
    """state: (B, state_size) f32; wslab/bslab from pack_params.
    Returns (q_values, (h_n, c_n)) like the PyTorch module with hidden=None."""
    B, S = state.shape
    assert 4 * H == LANES, "packed kernel assumes 4*hidden_size == 128 lanes"
    assert S <= LANES and A <= LANES

    bp8 = max(SUBLANES, ((B + SUBLANES - 1) // SUBLANES) * SUBLANES)
    # tile_b=256 fills the 256-row MXU on v6e/v7x (128 suffices on v5e) while
    # double-buffered x/out tiles stay far below every gen's scoped VMEM limit.
    TB = min(tile_b, bp8)
    BP = ((bp8 + TB - 1) // TB) * TB
    x_pad = jnp.zeros((BP, LANES), jnp.float32).at[:B, :S].set(state)

    # Weight/bias BlockSpecs use a constant index_map -> DMA'd once and kept
    # VMEM-resident across all batch tiles; only x / out tiles stream.  The
    # batch axis is "parallel" so it shards across both v7x TensorCores when
    # BP/TB > 1 (no-op on v5e/v6e and at B=2).
    out = pl.pallas_call(
        functools.partial(dueling_dqn_kernel, H=H, A=A),
        out_shape=jax.ShapeDtypeStruct((2, BP, LANES), jnp.float32),
        grid=(BP // TB,),
        in_specs=[
            pl.BlockSpec((TB, LANES), lambda i: (i, 0)),
            pl.BlockSpec((5, LANES, LANES), lambda i: (0, 0, 0)),
            pl.BlockSpec((SUBLANES, LANES), lambda i: (0, 0)),
        ],
        out_specs=pl.BlockSpec((2, TB, LANES), lambda i: (0, i, 0)),
        compiler_params=pltpu.CompilerParams(
            dimension_semantics=("parallel",)),
    )(x_pad, wslab, bslab)

    q = out[0, :B, :A]
    c_n = out[1, :B, :H]
    h_n = out[1, :B, 2 * H:3 * H]
    # PyTorch LSTM returns hidden as (h_n, c_n), each (num_layers=1, B, H).
    return q, (h_n[None, :, :], c_n[None, :, :])


# ---------------------- deterministic parameter setup ------------------------
def _uniform(key, shape, bound):
    return jax.random.uniform(key, shape, jnp.float32, -bound, bound)


def _scale_noise(key, size):
    x = jax.random.normal(key, (size,), jnp.float32)
    return jnp.sign(x) * jnp.sqrt(jnp.abs(x))


def _noisy_linear_effective(key, in_f, out_f, std_init=0.5):
    """Training-mode effective weight/bias of NoisyLinear, as (in, out) / (1, out)."""
    k_mu_w, k_mu_b, k_eps_in, k_eps_out = jax.random.split(key, 4)
    mu_range = 1.0 / jnp.sqrt(jnp.float32(in_f))
    w_mu = _uniform(k_mu_w, (out_f, in_f), mu_range)
    b_mu = _uniform(k_mu_b, (out_f,), mu_range)
    w_sigma = jnp.full((out_f, in_f), std_init / jnp.sqrt(jnp.float32(in_f)), jnp.float32)
    b_sigma = jnp.full((out_f,), std_init / jnp.sqrt(jnp.float32(out_f)), jnp.float32)
    eps_in = _scale_noise(k_eps_in, in_f)
    eps_out = _scale_noise(k_eps_out, out_f)
    w = w_mu + w_sigma * jnp.outer(eps_out, eps_in)
    b = b_mu + b_sigma * eps_out
    return w.T, b[None, :]


def _linear(key, in_f, out_f):
    kw, kb = jax.random.split(key)
    bound = 1.0 / jnp.sqrt(jnp.float32(in_f))
    w = _uniform(kw, (out_f, in_f), bound)
    b = _uniform(kb, (out_f,), bound)
    return w.T, b[None, :]


def make_params(key, state_size, action_size, hidden_size):
    ks = jax.random.split(key, 10)
    w1, b1 = _linear(ks[0], state_size, hidden_size)
    w2, b2 = _linear(ks[1], hidden_size, hidden_size)

    # LSTM(hidden, hidden): W_ih (4H, H), b_ih (4H,), b_hh (4H,).
    bound = 1.0 / jnp.sqrt(jnp.float32(hidden_size))
    wih = _uniform(ks[2], (4 * hidden_size, hidden_size), bound).T          # (H, 4H)
    b_ih = _uniform(ks[3], (4 * hidden_size,), bound)
    b_hh = _uniform(ks[4], (4 * hidden_size,), bound)
    blstm = (b_ih + b_hh)[None, :]
    # TODO(synk): W_hh is unused because hidden=None => h0 = 0; a stateful
    # multi-step LSTM would need the recurrent matmul added to the kernel.

    wah, bah = _noisy_linear_effective(ks[5], hidden_size, hidden_size)
    wa, ba = _noisy_linear_effective(ks[6], hidden_size, action_size)
    wvh, bvh = _noisy_linear_effective(ks[7], hidden_size, hidden_size)
    wv, bv = _noisy_linear_effective(ks[8], hidden_size, 1)

    return dict(w1=w1, b1=b1, w2=w2, b2=b2, wih=wih, blstm=blstm,
                wah=wah, bah=bah, wa=wa, ba=ba, wvh=wvh, bvh=bvh, wv=wv, bv=bv)


# --------------------------- pure-JAX reference -------------------------------
def reference_forward(state, p):
    H = p["w2"].shape[1]
    f1 = jax.nn.relu(state @ p["w1"] + p["b1"])
    f2 = jax.nn.relu(f1 @ p["w2"] + p["b2"])
    gates = f2 @ p["wih"] + p["blstm"]
    i_g = jax.nn.sigmoid(gates[:, 0 * H:1 * H])
    g_g = jnp.tanh(gates[:, 2 * H:3 * H])
    o_g = jax.nn.sigmoid(gates[:, 3 * H:4 * H])
    c = i_g * g_g
    h = o_g * jnp.tanh(c)
    adv_h = jax.nn.relu(h @ p["wah"] + p["bah"])
    val_h = jax.nn.relu(h @ p["wvh"] + p["bvh"])
    adv = adv_h @ p["wa"] + p["ba"]
    val = val_h @ p["wv"] + p["bv"]
    q = val + (adv - jnp.mean(adv, axis=1, keepdims=True))
    return q, (h[None], c[None])


if __name__ == "__main__":
    B, STATE, ACTIONS, HIDDEN = 2, 8, 4, 32

    key = jax.random.PRNGKey(0)
    k_params, k_state = jax.random.split(key)
    params = make_params(k_params, STATE, ACTIONS, HIDDEN)
    state = jax.random.normal(k_state, (B, STATE), jnp.float32)

    # Pack ONCE (weight residency) and reuse the slabs for every forward step.
    wslab, bslab = pack_params(params, S=STATE, H=HIDDEN, A=ACTIONS)
    forward = jax.jit(functools.partial(dueling_dqn_forward, H=HIDDEN, A=ACTIONS))

    q, (h_n, c_n) = forward(state, wslab, bslab)
    jax.block_until_ready((q, h_n, c_n))

    q_ref, (h_ref, c_ref) = reference_forward(state, params)
    assert q.shape == (B, ACTIONS)
    assert h_n.shape == (1, B, HIDDEN) and c_n.shape == (1, B, HIDDEN)
    # bf16 MXU operands -> loosened tolerance vs. the pure-f32 reference.
    assert jnp.allclose(q, q_ref, atol=3e-2, rtol=3e-2)
    assert jnp.allclose(h_n, h_ref, atol=3e-2, rtol=3e-2)
    assert jnp.allclose(c_n, c_ref, atol=3e-2, rtol=3e-2)

    print("KERNEL_OK")
</pallas_src>

<mosaic_0001>
module attributes {stable_mosaic.version = 11 : i64} {
  func.func @dueling_dqn_kernel(%arg0: i32, %arg1: memref<8x128xf32, #tpu.memory_space<vmem>>, %arg2: memref<5x128x128xbf16, #tpu.memory_space<vmem>>, %arg3: memref<8x128xf32, #tpu.memory_space<vmem>>, %arg4: memref<2x8x128xf32, #tpu.memory_space<vmem>>) attributes {dimension_semantics = [#tpu.dimension_semantics<parallel>], iteration_bounds = array<i64: 1>, scalar_prefetch = 0 : i64, scratch_operands = 0 : i64, tpu.core_type = #tpu.core_type<tc>, window_params = [{transform_indices = @transform_0, window_bounds = array<i64: 8, 128>}, {pipeline_mode = #tpu.pipeline_mode<synchronous>, transform_indices = @transform_1, window_bounds = array<i64: 5, 128, 128>}, {pipeline_mode = #tpu.pipeline_mode<synchronous>, transform_indices = @transform_2, window_bounds = array<i64: 8, 128>}, {transform_indices = @transform_3, window_bounds = array<i64: 2, 8, 128>}]} {
    %c0 = arith.constant 0 : index
    %c0_0 = arith.constant 0 : index
    %0 = vector.load %arg1[%c0, %c0_0] : memref<8x128xf32, #tpu.memory_space<vmem>>, vector<8x128xf32>
    %c0_1 = arith.constant 0 : index
    %c0_2 = arith.constant 0 : index
    %1 = vector.load %arg3[%c0_1, %c0_2] : memref<8x128xf32, #tpu.memory_space<vmem>>, vector<8x128xf32>
    %2 = arith.truncf %0 : vector<8x128xf32> to vector<8x128xbf16>
    %c0_3 = arith.constant 0 : index
    %c0_4 = arith.constant 0 : index
    %c0_5 = arith.constant 0 : index
    %3 = vector.load %arg2[%c0_3, %c0_4, %c0_5] : memref<5x128x128xbf16, #tpu.memory_space<vmem>>, vector<1x128x128xbf16>
    %4 = vector.shape_cast %3 : vector<1x128x128xbf16> to vector<128x128xbf16>
    %cst = arith.constant dense<0.000000e+00> : vector<8x128xf32>
    %5 = tpu.matmul %2, %4, %cst {dimension_numbers = #tpu.dot_dimension_numbers<[1], [0], [0], [1], [0, 0, 1, 1], [], []>} : vector<8x128xbf16>, vector<128x128xbf16>, vector<8x128xf32> -> vector<8x128xf32>
    %6 = vector.extract_strided_slice %1 {offsets = [0, 0], sizes = [1, 128], strides = [1, 1]} : vector<8x128xf32> to vector<1x128xf32>
    %7 = vector.broadcast %6 : vector<1x128xf32> to vector<8x128xf32>
    %8 = arith.addf %5, %7 : vector<8x128xf32>
    %cst_6 = arith.constant 0.000000e+00 : f32
    %9 = vector.broadcast %cst_6 : f32 to vector<8x128xf32>
    %10 = arith.maximumf %8, %9 : vector<8x128xf32>
    %11 = arith.truncf %10 : vector<8x128xf32> to vector<8x128xbf16>
    %c1 = arith.constant 1 : index
    %c0_7 = arith.constant 0 : index
    %c0_8 = arith.constant 0 : index
    %12 = vector.load %arg2[%c1, %c0_7, %c0_8] : memref<5x128x128xbf16, #tpu.memory_space<vmem>>, vector<1x128x128xbf16>
    %13 = vector.shape_cast %12 : vector<1x128x128xbf16> to vector<128x128xbf16>
    %cst_9 = arith.constant dense<0.000000e+00> : vector<8x128xf32>
    %14 = tpu.matmul %11, %13, %cst_9 {dimension_numbers = #tpu.dot_dimension_numbers<[1], [0], [0], [1], [0, 0, 1, 1], [], []>} : vector<8x128xbf16>, vector<128x128xbf16>, vector<8x128xf32> -> vector<8x128xf32>
    %15 = vector.extract_strided_slice %1 {offsets = [1, 0], sizes = [1, 128], strides = [1, 1]} : vector<8x128xf32> to vector<1x128xf32>
    %16 = vector.broadcast %15 : vector<1x128xf32> to vector<8x128xf32>
    %17 = arith.addf %14, %16 : vector<8x128xf32>
    %cst_10 = arith.constant 0.000000e+00 : f32
    %18 = vector.broadcast %cst_10 : f32 to vector<8x128xf32>
    %19 = arith.maximumf %17, %18 : vector<8x128xf32>
    %20 = arith.truncf %19 : vector<8x128xf32> to vector<8x128xbf16>
    %c2 = arith.constant 2 : index
    %c0_11 = arith.constant 0 : index
    %c0_12 = arith.constant 0 : index
    %21 = vector.load %arg2[%c2, %c0_11, %c0_12] : memref<5x128x128xbf16, #tpu.memory_space<vmem>>, vector<1x128x128xbf16>
    %22 = vector.shape_cast %21 : vector<1x128x128xbf16> to vector<128x128xbf16>
    %cst_13 = arith.constant dense<0.000000e+00> : vector<8x128xf32>
    %23 = tpu.matmul %20, %22, %cst_13 {dimension_numbers = #tpu.dot_dimension_numbers<[1], [0], [0], [1], [0, 0, 1, 1], [], []>} : vector<8x128xbf16>, vector<128x128xbf16>, vector<8x128xf32> -> vector<8x128xf32>
    %24 = vector.extract_strided_slice %1 {offsets = [2, 0], sizes = [1, 128], strides = [1, 1]} : vector<8x128xf32> to vector<1x128xf32>
    %25 = vector.broadcast %24 : vector<1x128xf32> to vector<8x128xf32>
    %26 = arith.addf %23, %25 : vector<8x128xf32>
    %27 = arith.negf %26 : vector<8x128xf32>
    %28 = math.exp %27 : vector<8x128xf32>
    %cst_14 = arith.constant 1.000000e+00 : f32
    %29 = vector.broadcast %cst_14 : f32 to vector<8x128xf32>
    %30 = arith.addf %29, %28 : vector<8x128xf32>
    %31 = arith.divf %29, %30 : vector<8x128xf32>
    %32 = math.tanh %26 : vector<8x128xf32>
    %c64_i32 = arith.constant 64 : i32
    %33 = tpu.dynamic_rotate %32 by %c64_i32 dim 1 : vector<8x128xf32>, i32 -> vector<8x128xf32>
    %34 = arith.mulf %31, %33 : vector<8x128xf32>
    %35 = math.tanh %34 : vector<8x128xf32>
    %c32_i32 = arith.constant 32 : i32
    %36 = tpu.dynamic_rotate %31 by %c32_i32 dim 1 : vector<8x128xf32>, i32 -> vector<8x128xf32>
    %37 = arith.mulf %36, %35 : vector<8x128xf32>
    %38 = arith.truncf %37 : vector<8x128xf32> to vector<8x128xbf16>
    %c3 = arith.constant 3 : index
    %c0_15 = arith.constant 0 : index
    %c0_16 = arith.constant 0 : index
    %39 = vector.load %arg2[%c3, %c0_15, %c0_16] : memref<5x128x128xbf16, #tpu.memory_space<vmem>>, vector<1x128x128xbf16>
    %40 = vector.shape_cast %39 : vector<1x128x128xbf16> to vector<128x128xbf16>
    %cst_17 = arith.constant dense<0.000000e+00> : vector<8x128xf32>
    %41 = tpu.matmul %38, %40, %cst_17 {dimension_numbers = #tpu.dot_dimension_numbers<[1], [0], [0], [1], [0, 0, 1, 1], [], []>} : vector<8x128xbf16>, vector<128x128xbf16>, vector<8x128xf32> -> vector<8x128xf32>
    %42 = vector.extract_strided_slice %1 {offsets = [3, 0], sizes = [1, 128], strides = [1, 1]} : vector<8x128xf32> to vector<1x128xf32>
    %43 = vector.broadcast %42 : vector<1x128xf32> to vector<8x128xf32>
    %44 = arith.addf %41, %43 : vector<8x128xf32>
    %cst_18 = arith.constant 0.000000e+00 : f32
    %45 = vector.broadcast %cst_18 : f32 to vector<8x128xf32>
    %46 = arith.maximumf %44, %45 : vector<8x128xf32>
    %47 = arith.truncf %46 : vector<8x128xf32> to vector<8x128xbf16>
    %c4 = arith.constant 4 : index
    %c0_19 = arith.constant 0 : index
    %c0_20 = arith.constant 0 : index
    %48 = vector.load %arg2[%c4, %c0_19, %c0_20] : memref<5x128x128xbf16, #tpu.memory_space<vmem>>, vector<1x128x128xbf16>
    %49 = vector.shape_cast %48 : vector<1x128x128xbf16> to vector<128x128xbf16>
    %cst_21 = arith.constant dense<0.000000e+00> : vector<8x128xf32>
    %50 = tpu.matmul %47, %49, %cst_21 {dimension_numbers = #tpu.dot_dimension_numbers<[1], [0], [0], [1], [0, 0, 1, 1], [], []>} : vector<8x128xbf16>, vector<128x128xbf16>, vector<8x128xf32> -> vector<8x128xf32>
    %51 = vector.extract_strided_slice %1 {offsets = [4, 0], sizes = [1, 128], strides = [1, 1]} : vector<8x128xf32> to vector<1x128xf32>
    %52 = vector.broadcast %51 : vector<1x128xf32> to vector<8x128xf32>
    %53 = arith.addf %50, %52 : vector<8x128xf32>
    %54 = tpu.iota {dimensions = array<i32: 1>} : vector<8x128xi32>
    %c32_i32_22 = arith.constant 32 : i32
    %55 = vector.broadcast %c32_i32_22 : i32 to vector<8x128xi32>
    %56 = arith.cmpi slt, %54, %55 : vector<8x128xi32>
    %c64_i32_23 = arith.constant 64 : i32
    %57 = tpu.dynamic_rotate %37 by %c64_i32_23 dim 1 : vector<8x128xf32>, i32 -> vector<8x128xf32>
    %58 = arith.select %56, %34, %57 : vector<8x128xi1>, vector<8x128xf32>
    %c0_24 = arith.constant 0 : index
    %c0_25 = arith.constant 0 : index
    %c0_26 = arith.constant 0 : index
    %59 = vector.load %arg4[%c0_24, %c0_25, %c0_26] : memref<2x8x128xf32, #tpu.memory_space<vmem>>, vector<1x8x128xf32>
    %60 = vector.shape_cast %59 : vector<1x8x128xf32> to vector<8x128xf32>
    %61 = vector.shape_cast %53 : vector<8x128xf32> to vector<1x8x128xf32>
    tpu.vector_store %arg4[%c0_24, %c0_25, %c0_26], %61 {strides = array<i32>} : memref<2x8x128xf32, #tpu.memory_space<vmem>>, vector<1x8x128xf32>,
    %c1_27 = arith.constant 1 : index
    %c0_28 = arith.constant 0 : index
    %c0_29 = arith.constant 0 : index
    %62 = vector.load %arg4[%c1_27, %c0_28, %c0_29] : memref<2x8x128xf32, #tpu.memory_space<vmem>>, vector<1x8x128xf32>
    %63 = vector.shape_cast %62 : vector<1x8x128xf32> to vector<8x128xf32>
    %64 = vector.shape_cast %58 : vector<8x128xf32> to vector<1x8x128xf32>
    tpu.vector_store %arg4[%c1_27, %c0_28, %c0_29], %64 {strides = array<i32>} : memref<2x8x128xf32, #tpu.memory_space<vmem>>, vector<1x8x128xf32>,
    return
  }
  func.func @transform_0(%arg0: i32) -> (i32, i32) {
    %c0_i32 = arith.constant 0 : i32
    %c0_i32_0 = arith.constant 0 : i32
    return %arg0, %c0_i32 : i32, i32
  }
  func.func @transform_1(%arg0: i32) -> (i32, i32, i32) {
    %c0_i32 = arith.constant 0 : i32
    %c0_i32_0 = arith.constant 0 : i32
    %c0_i32_1 = arith.constant 0 : i32
    %c0_i32_2 = arith.constant 0 : i32
    return %c0_i32, %c0_i32_0, %c0_i32_1 : i32, i32, i32
  }
  func.func @transform_2(%arg0: i32) -> (i32, i32) {
    %c0_i32 = arith.constant 0 : i32
    %c0_i32_0 = arith.constant 0 : i32
    %c0_i32_1 = arith.constant 0 : i32
    return %c0_i32, %c0_i32_0 : i32, i32
  }
  func.func @transform_3(%arg0: i32) -> (i32, i32, i32) {
    %c0_i32 = arith.constant 0 : i32
    %c0_i32_0 = arith.constant 0 : i32
    %c0_i32_1 = arith.constant 0 : i32
    return %c0_i32, %arg0, %c0_i32_0 : i32, i32, i32
  }
}

</mosaic_0001>

<bundles_post_ra>
// kernel: dueling_dqn_forward.1
= control target key start
LH: loop header
LB: loop body
LE: loop exit
PB: predicated region body
PF: predicated region fallthrough
CT: control target
= control target key end

     0   :  { %8 = vsyncpa [#allocation3], 0  ;;  %s876_s12 = smov [#allocation2]   ;;  %s996_s0 = inlined_call_operand.vmem [shape: f32[8,128], index: 0, kind: input, shape index: {}]   ;;  %s997_s1 = inlined_call_operand.hbm [shape: bf16[5,128,128], index: 1, kind: input, shape index: {}]   ;;  %s998_s2 = inlined_call_operand.vmem [shape: f32[8,128], index: 2, kind: input, shape index: {}]   ;;  %s999_s3 = inlined_call_operand.vmem [shape: f32[2,8,128], index: 3, kind: output, shape index: {}]  }
   0x1   :  { %s16_s13 = sshll.u32 %s876_s12, 4  ;;  %s852_s16 = scalar_lea.hbm %s997_s1, 5120  ;;  %s17_s13 = int_to_ptr.vmem [resolvable:$true] %s16_s13 }
   0x2   :  { %p853_p0 = scmp.ne.s32.totalorder %s997_s1, %s852_s16  ;;  %p856_p1 = scmp.lt.u32.totalorder %s852_s16, %s997_s1 }
   0x4   :  { %p858_p2 = pnand %p856_p1, %p853_p0 }
   0x6   :  { %861 = shalt.err (!%p858_p2)
}
   0x7   :  { %s862_s21 = scalar_lea.vmem %s17_s13, 5120  ;;  %p867_p4 = scmp.lt.s32.totalorder %s17_s13, %s17_s13 }
   0x8   :  { %p863_p3 = scmp.ne.s32.totalorder %s17_s13, %s862_s21  ;;  %p868_p5 = scmp.lt.s32.totalorder %s862_s21, %s862_s21 }
   0xa   :  { %p869_p6 = por %p868_p5, %p867_p4 }
   0xc   :  { %p870_p7 = pnand %p869_p6, %p863_p3 }
   0xe   :  { %873 = shalt.err (!%p870_p7)
}
   0xf   :  { %s877_s22 = smov 64   ;;  %s878_s23 = smov 4  }
  0x10   :  { %22 = dma.hbm_to_vmem [thread:$0]  %s997_s1, 5120, %s17_s13, [#allocation3], %s877_s22, %s877_s22, %s878_s23  }
  0x11   :  { %874 = dma.done.wait [#allocation3], 5120  }
  0x12   :  { %875 = vsyncadd [#allocation3], 4294962176  ;;  %v879_v0 = vmov 0.0   ;;  %vm880_vm0 = vmmov 0   ;;  %v804_v1 = vld [vmem:[#allocation2] sm:$0xff]   ;;  %v805_v2 = vld [vmem:[#allocation2 + $0x8] sm:$0xff]   ;;  %v48_v25 = vlaneseq }
  0x13   :  { %698 = vmatprep.subr.bf16.mxu0 %v879_v0  ;;  %714 = vmatprep.mubr.msk.bf16.mxu0 %vm880_vm0, %v879_v0  ;;  %v806_v3 = vld [vmem:[#allocation2 + $0x10] sm:$0xff]   ;;  %v812_v4 = vld [vmem:[#allocation2 + $0x40] sm:$0xff]   ;;  %v807_v5 = vld [vmem:[#allocation2 + $0x18] sm:$0xff]  }
  0x14   :  { %718 = vmatprep.subr.bf16.mxu1 %v879_v0  ;;  %734 = vmatprep.mubr.msk.bf16.mxu1 %vm880_vm0, %v879_v0  ;;  %v813_v6 = vld [vmem:[#allocation2 + $0x48] sm:$0xff]   ;;  %v808_v7 = vld [vmem:[#allocation2 + $0x20] sm:$0xff]   ;;  %v814_v8 = vld [vmem:[#allocation2 + $0x50] sm:$0xff]   ;;  %v950_v26 = vshrl.u32 %v48_v25, 7 }
  0x15   :  { %699 = vmatpush3.bf16.msra.mxu0 %v804_v1  ;;  %719 = vmatpush3.bf16.msra.mxu1 %v812_v4  ;;  %v809_v9 = vld [vmem:[#allocation2 + $0x28] sm:$0xff]   ;;  %v815_v10 = vld [vmem:[#allocation2 + $0x58] sm:$0xff]   ;;  %v810_v11 = vld [vmem:[#allocation2 + $0x30] sm:$0xff]  }
  0x16   :  { %700 = vmatprep.subr.bf16.mxu0 %v879_v0  ;;  %720 = vmatprep.subr.bf16.mxu1 %v879_v0  ;;  %v816_v12 = vld [vmem:[#allocation2 + $0x60] sm:$0xff]   ;;  %v811_v13 = vld [vmem:[#allocation2 + $0x38] sm:$0xff]   ;;  %v817_v15 = vld [vmem:[#allocation2 + $0x68] sm:$0xff]   ;;  %v50_v27 = vsub.s32 0, %v950_v26  ;;  %v161_v39 = vsub.s32 1, %v950_v26  ;;  %v272_v51 = vsub.s32 2, %v950_v26 }
  0x17   :  { %v29_v14 = vld [vmem:[%s996_s0] sm:$0xff]  ;;  %v818_v17 = vld [vmem:[#allocation2 + $0x70] sm:$0xff]   ;;  %v819_v18 = vld [vmem:[#allocation2 + $0x78] sm:$0xff]  }
  0x18   :  { %v31_v16 = vpack.c.bf16 %v29_v14, %v29_v14  ;;  %v820_v19 = vld [vmem:[#allocation2 + $0x80] sm:$0xff]   ;;  %v821_v20 = vld [vmem:[#allocation2 + $0x88] sm:$0xff]   ;;  %v822_v21 = vld [vmem:[#allocation2 + $0x90] sm:$0xff]  }
  0x19   :  { %701 = vmatpush3.bf16.msra.mxu0 %v805_v2  ;;  %721 = vmatpush3.bf16.msra.mxu1 %v813_v6  ;;  %v823_v22 = vld [vmem:[#allocation2 + $0x98] sm:$0xff]   ;;  %v824_v23 = vld [vmem:[#allocation2 + $0xa0] sm:$0xff]   ;;  %v825_v24 = vld [vmem:[#allocation2 + $0xa8] sm:$0xff]  }
  0x1a   :  { %702 = vmatprep.subr.bf16.mxu0 %v879_v0  ;;  %722 = vmatprep.subr.bf16.mxu1 %v879_v0  ;;  %v956_v28 = vld [vmem:[%s998_s2] sm:$0xff]  ;;  %v826_v37 = vld [vmem:[#allocation2 + $0xb0] sm:$0xff]   ;;  %v827_v38 = vld [vmem:[#allocation2 + $0xb8] sm:$0xff]   ;;  %s881_s2 = smov 32  }
  0x1b   :  { %v51_v29 = vrot.slane %v956_v28, %v50_v27  ;;  %v162_v40 = vrot.slane %v956_v28, %v161_v39  ;;  %v828_v48 = vld [vmem:[#allocation2 + $0xc0] sm:$0xff]   ;;  %v829_v49 = vld [vmem:[#allocation2 + $0xc8] sm:$0xff]   ;;  %v830_v50 = vld [vmem:[#allocation2 + $0xd0] sm:$0xff]   ;;  %v273_v52 = vrot.slane %v956_v28, %v272_v51 }
  0x1c   :  { %v831_v53 = vld [vmem:[#allocation2 + $0xd8] sm:$0xff]   ;;  %v832_v60 = vld [vmem:[#allocation2 + $0xe0] sm:$0xff]   ;;  %v833_v61 = vld [vmem:[#allocation2 + $0xe8] sm:$0xff]  }
  0x1d   :  { %703 = vmatpush3.bf16.msra.mxu0 %v806_v3  ;;  %723 = vmatpush3.bf16.msra.mxu1 %v814_v8  ;;  %v834_v62 = vld [vmem:[#allocation2 + $0xf0] sm:$0xff]   ;;  %v835_v2 = vld [vmem:[#allocation2 + $0xf8] sm:$0xff]   ;;  %v837_v8 = vld [vmem:[#allocation2 + $0x108] sm:$0xff]  }
  0x1e   :  { %704 = vmatprep.subr.bf16.mxu0 %v879_v0  ;;  %724 = vmatprep.subr.bf16.mxu1 %v879_v0 }
  0x21   :  { %705 = vmatpush3.bf16.msra.mxu0 %v807_v5  ;;  %725 = vmatpush3.bf16.msra.mxu1 %v815_v10 }
  0x22   :  { %706 = vmatprep.subr.bf16.mxu0 %v879_v0  ;;  %726 = vmatprep.subr.bf16.mxu1 %v879_v0 }
  0x25   :  { %707 = vmatpush3.bf16.msra.mxu0 %v808_v7  ;;  %727 = vmatpush3.bf16.msra.mxu1 %v816_v12  ;;  %v836_v7 = vld [vmem:[#allocation2 + $0x100] sm:$0xff]  }
  0x26   :  { %708 = vmatprep.subr.bf16.mxu0 %v879_v0  ;;  %728 = vmatprep.subr.bf16.mxu1 %v879_v0 }
  0x29   :  { %709 = vmatpush3.bf16.msra.mxu0 %v809_v9  ;;  %729 = vmatpush3.bf16.msra.mxu1 %v817_v15  ;;  %v838_v9 = vld [vmem:[#allocation2 + $0x110] sm:$0xff]   ;;  %v840_v15 = vld [vmem:[#allocation2 + $0x120] sm:$0xff]  }
  0x2a   :  { %710 = vmatprep.subr.bf16.mxu0 %v879_v0  ;;  %730 = vmatprep.subr.bf16.mxu1 %v879_v0 }
  0x2d   :  { %711 = vmatpush3.bf16.msra.mxu0 %v810_v11  ;;  %731 = vmatpush3.bf16.msra.mxu1 %v818_v17  ;;  %v842_v17 = vld [vmem:[#allocation2 + $0x130] sm:$0xff]  }
  0x2e   :  { %712 = vmatprep.subr.bf16.mxu0 %v879_v0  ;;  %732 = vmatprep.subr.bf16.mxu1 %v879_v0 }
  0x31   :  { %713 = vmatpush3.bf16.msra.mxu0 %v811_v13  ;;  %733 = vmatpush3.bf16.msra.mxu1 %v819_v18  ;;  %v839_v13 = vld [vmem:[#allocation2 + $0x118] sm:$0xff]  }
  0x32   :  { %738 = vmatprep.subr.bf16.mxu0 %v879_v0  ;;  %758 = vmatprep.subr.bf16.mxu1 %v879_v0  ;;  %v843_v18 = vld [vmem:[#allocation2 + $0x138] sm:$0xff]  }
  0x34   :  { %715 = vmatmul.mubr.bf16.vlgmr.msra.gmra.mrb[0].mxu0 %v31_v16  ;;  %v841_v16 = vld [vmem:[#allocation2 + $0x128] sm:$0xff]  }
  0x35   :  { %754 = vmatprep.mubr.msk.bf16.mxu0 %vm880_vm0, %v879_v0  ;;  %739 = vmatpush3.bf16.msra.mxu0 %v820_v19  ;;  %v598_v19 = vand.u32 127, %v48_v25  ;;  %v507_v25 = vsub.s32 4, %v950_v26 }
  0x36   :  { %740 = vmatprep.subr.bf16.mxu0 %v879_v0 }
  0x37   :  { %vm599_vm1 = vcmp.lt.s32.totalorder %v598_v19, 32 }
  0x39   :  { %741 = vmatpush3.bf16.msra.mxu0 %v821_v20 }
  0x3a   :  { %742 = vmatprep.subr.bf16.mxu0 %v879_v0 }
  0x3d   :  { %743 = vmatpush3.bf16.msra.mxu0 %v822_v21 }
  0x3e   :  { %744 = vmatprep.subr.bf16.mxu0 %v879_v0 }
  0x41   :  { %745 = vmatpush3.bf16.msra.mxu0 %v823_v22  ;;  %v396_v22 = vsub.s32 3, %v950_v26 }
  0x42   :  { %746 = vmatprep.subr.bf16.mxu0 %v879_v0 }
  0x45   :  { %747 = vmatpush3.bf16.msra.mxu0 %v824_v23  ;;  %v397_v23 = vrot.slane %v956_v28, %v396_v22 }
  0x46   :  { %748 = vmatprep.subr.bf16.mxu0 %v879_v0 }
  0x49   :  { %749 = vmatpush3.bf16.msra.mxu0 %v825_v24 }
  0x4a   :  { %750 = vmatprep.subr.bf16.mxu0 %v879_v0 }
  0x4d   :  { %751 = vmatpush3.bf16.msra.mxu0 %v826_v37 }
  0x4e   :  { %752 = vmatprep.subr.bf16.mxu0 %v879_v0 }
  0x51   :  { %753 = vmatpush3.bf16.msra.mxu0 %v827_v38 }
  0x52   :  { %778 = vmatprep.subr.bf16.mxu0 %v879_v0 }
 0x107   :  { %v134_v30 = vpop.f32.mrb[0].mxu0 }
 0x108   :  { %v135_v31 = vadd.f32 %v134_v30, %v51_v29  ;;  %v716_v32 = vpop.f32.mrb[1].mxu0 }
 0x109   :  { %v137_v33 = vpop.f32.mrb[2].mxu0 }
 0x10a   :  { %v140_v34 = vmax.f32 %v135_v31, 0.0  ;;  %v717_v35 = vpop.f32.mrb[3].mxu0  ;;  %v508_v33 = vrot.slane %v956_v28, %v507_v25 }
 0x10c   :  { %v141_v36 = vpack.c.bf16 %v140_v34, %v140_v34 }
 0x10e   :  { %735 = vmatmul.mubr.bf16.vlgmr.msra.gmra.mrb[0].mxu1 %v141_v36 }
 0x10f   :  { %774 = vmatprep.mubr.msk.bf16.mxu1 %vm880_vm0, %v879_v0  ;;  %759 = vmatpush3.bf16.msra.mxu1 %v828_v48 }
 0x110   :  { %760 = vmatprep.subr.bf16.mxu1 %v879_v0 }
 0x113   :  { %761 = vmatpush3.bf16.msra.mxu1 %v829_v49 }
 0x114   :  { %762 = vmatprep.subr.bf16.mxu1 %v879_v0 }
 0x117   :  { %763 = vmatpush3.bf16.msra.mxu1 %v830_v50 }
 0x118   :  { %764 = vmatprep.subr.bf16.mxu1 %v879_v0 }
 0x11b   :  { %765 = vmatpush3.bf16.msra.mxu1 %v831_v53 }
 0x11c   :  { %766 = vmatprep.subr.bf16.mxu1 %v879_v0 }
 0x11f   :  { %767 = vmatpush3.bf16.msra.mxu1 %v832_v60 }
 0x120   :  { %768 = vmatprep.subr.bf16.mxu1 %v879_v0 }
 0x123   :  { %769 = vmatpush3.bf16.msra.mxu1 %v833_v61 }
 0x124   :  { %770 = vmatprep.subr.bf16.mxu1 %v879_v0 }
 0x127   :  { %771 = vmatpush3.bf16.msra.mxu1 %v834_v62 }
 0x128   :  { %772 = vmatprep.subr.bf16.mxu1 %v879_v0 }
 0x12b   :  { %773 = vmatpush3.bf16.msra.mxu1 %v835_v2 }
 0x1e1   :  { %v245_v41 = vpop.f32.mrb[0].mxu1 }
 0x1e2   :  { %v246_v42 = vadd.f32 %v245_v41, %v162_v40  ;;  %v736_v43 = vpop.f32.mrb[1].mxu1 }
 0x1e3   :  { %v248_v44 = vpop.f32.mrb[2].mxu1 }
 0x1e4   :  { %v251_v45 = vmax.f32 %v246_v42, 0.0  ;;  %v737_v46 = vpop.f32.mrb[3].mxu1 }
 0x1e6   :  { %v252_v47 = vpack.c.bf16 %v251_v45, %v251_v45 }
 0x1e8   :  { %755 = vmatmul.mubr.bf16.vlgmr.msra.gmra.mrb[4].mxu0 %v252_v47 }
 0x1e9   :  { %794 = vmatprep.mubr.msk.bf16.mxu0 %vm880_vm0, %v879_v0  ;;  %779 = vmatpush3.bf16.msra.mxu0 %v836_v7 }
 0x1ea   :  { %780 = vmatprep.subr.bf16.mxu0 %v879_v0 }
 0x1ed   :  { %781 = vmatpush3.bf16.msra.mxu0 %v837_v8 }
 0x1ee   :  { %782 = vmatprep.subr.bf16.mxu0 %v879_v0 }
 0x1f1   :  { %783 = vmatpush3.bf16.msra.mxu0 %v838_v9 }
 0x1f2   :  { %784 = vmatprep.subr.bf16.mxu0 %v879_v0 }
 0x1f5   :  { %785 = vmatpush3.bf16.msra.mxu0 %v839_v13 }
 0x1f6   :  { %786 = vmatprep.subr.bf16.mxu0 %v879_v0 }
 0x1f9   :  { %787 = vmatpush3.bf16.msra.mxu0 %v840_v15 }
 0x1fa   :  { %788 = vmatprep.subr.bf16.mxu0 %v879_v0 }
 0x1fd   :  { %789 = vmatpush3.bf16.msra.mxu0 %v841_v16 }
 0x1fe   :  { %790 = vmatprep.subr.bf16.mxu0 %v879_v0 }
 0x201   :  { %791 = vmatpush3.bf16.msra.mxu0 %v842_v17 }
 0x202   :  { %792 = vmatprep.subr.bf16.mxu0 %v879_v0 }
 0x205   :  { %793 = vmatpush3.bf16.msra.mxu0 %v843_v18 }
 0x2bb   :  { %v356_v54 = vpop.f32.mrb[4].mxu0 }
 0x2bc   :  { %v357_v55 = vadd.f32 %v356_v54, %v273_v52  ;;  %v756_v56 = vpop.f32.mrb[5].mxu0 }
 0x2bd   :  { %v359_v57 = vpop.f32.mrb[6].mxu0 }
 0x2be   :  { %v635_v58 = vmul.f32 -1.442695, %v357_v55  ;;  %v757_v59 = vpop.f32.mrb[7].mxu0  ;;  %844 = vtanh.f32 %v357_v55 }
 0x2c0   :  { %846 = vpow2.f32 %v635_v58 }
 0x2c8   :  { %v845_v63 = vpop.eup %844 }
 0x2c9   :  { %369 = vrot.lane.b32.xlu0 %v845_v63, %s877_s22 }
 0x2ca   :  { %v847_v1 = vpop.eup %846 }
 0x2cb   :  { %v365_v3 = vadd.f32 1.0, %v847_v1 }
 0x2cd   :  { %848 = vrcp.f32 %v365_v3 }
 0x2d7   :  { %v849_v4 = vpop.eup %848 }
 0x2d8   :  { %373 = vrot.lane.b32.xlu0 %v849_v4, %s881_s2 }
 0x33b   :  { %v370_v5 = vpop.permute.xlu0 %369 }
 0x33c   :  { %v371_v6 = vmul.f32 %v849_v4, %v370_v5 }
 0x33e   :  { %850 = vtanh.f32 %v371_v6 }
 0x348   :  { %v851_v10 = vpop.eup %850 }
 0x34a   :  { %v374_v11 = vpop.permute.xlu0 %373 }
 0x34b   :  { %v375_v12 = vmul.f32 %v851_v10, %v374_v11 }
 0x34d   :  { %v376_v14 = vpack.c.bf16 %v375_v12, %v375_v12  ;;  %600 = vrot.lane.b32.xlu1 %v375_v12, %s877_s22 }
 0x34f   :  { %775 = vmatmul.mubr.bf16.vlgmr.msra.gmra.mrb[4].mxu1 %v376_v14 }
 0x3bf   :  { %v601_v20 = vpop.permute.xlu1 %600 }
 0x3c0   :  { %v602_v21 = vsel %vm599_vm1, %v371_v6, %v601_v20 }
 0x3c1   :  { %652 = vst [vmem:[%s999_s3 + $0x8] sm:$0xff] %v602_v21 }
 0x422   :  { %v480_v24 = vpop.f32.mrb[4].mxu1 }
 0x423   :  { %v481_v27 = vadd.f32 %v480_v24, %v397_v23  ;;  %v776_v29 = vpop.f32.mrb[5].mxu1 }
 0x424   :  { %v483_v30 = vpop.f32.mrb[6].mxu1 }
 0x425   :  { %v486_v0 = vmax.f32 %v481_v27, 0.0  ;;  %v777_v31 = vpop.f32.mrb[7].mxu1 }
 0x427   :  { %v487_v32 = vpack.c.bf16 %v486_v0, %v486_v0 }
 0x429   :  { %795 = vmatmul.mubr.bf16.vlgmr.msra.gmra.mrb[8].mxu0 %v487_v32 }
 0x4fc   :  { %v591_v34 = vpop.f32.mrb[8].mxu0 }
 0x4fd   :  { %v592_v35 = vadd.f32 %v591_v34, %v508_v33  ;;  %v796_v36 = vpop.f32.mrb[9].mxu0 }
 0x4fe   :  { %v594_v37 = vpop.f32.mrb[10].mxu0 }
 0x4ff   :  { %603 = vst [vmem:[%s999_s3] sm:$0xff] %v592_v35  ;;  %v797_v38 = vpop.f32.mrb[11].mxu0 }
 0x500   :  { %610 = vsyncpa [#allocation3], 1 }

</bundles_post_ra>
